<compile_context>
chip_gen: v5e
topology: v5e:2x2
jax: 0.10.0
libtpu: 0.0.40
codegen_flags: <defaults>
</compile_context>

<pallas_src>
import jax
import jax.numpy as jnp
from jax.experimental import pallas as pl
from jax.experimental.pallas import tpu as pltpu

_LANES = 128                         # TPU lane width
_MAX_COLS = 1024                     # widest lane-dense slab we try
_TARGET_TILE_BYTES = 2 * 1024 * 1024 # ~2 MiB per tile per array; with
                                     # double-buffered in+out that is ~8 MiB,
                                     # under v5e's 16 MiB scoped-VMEM default
                                     # and v7x's 64 MiB physical VMEM.
_SPLIT_THRESHOLD_BYTES = 4 * 1024 * 1024  # below this: single tile, no split

# ---- cheap sine: one Cody-Waite reduction + odd polynomial ------------------
_TWO_PI = 6.283185307179586
_INV_TWO_PI = 1.0 / _TWO_PI
_TWO_PI_HI = 6.28125                  # 7 mantissa bits -> n * HI exact
_TWO_PI_LO = _TWO_PI - _TWO_PI_HI     # ~1.93530717958648e-3
_PI = 3.141592653589793
_HALF_PI = 1.5707963267948966


def _fast_sine_f32(t):
    """sin(t) for f32 t, accurate to ~1e-6 abs for |t| up to a few thousand."""
    n = jnp.floor(t * _INV_TWO_PI + 0.5)            # nearest multiple of 2*pi
    r = (t - n * _TWO_PI_HI) - n * _TWO_PI_LO       # r in ~[-pi, pi]
    # Fold into [-pi/2, pi/2]: sin(r) == sin(pi - r) == sin(-pi - r).
    sign_pi = jnp.where(r >= 0.0, _PI, -_PI)
    r = jnp.where(jnp.abs(r) > _HALF_PI, sign_pi - r, r)
    z = r * r
    # Odd Taylor polynomial through r^13: truncation < 1e-9 on [-pi/2, pi/2].
    p = 1.0 / 6227020800.0
    p = p * z - 1.0 / 39916800.0
    p = p * z + 1.0 / 362880.0
    p = p * z - 1.0 / 5040.0
    p = p * z + 1.0 / 120.0
    p = p * z - 1.0 / 6.0
    return r + r * (z * p)


# ---- kernel ------------------------------------------------------------------
def _sine_kernel(w0_ref, x_ref, o_ref):
    # w0 comes from SMEM (avoids recompiling per distinct w0).
    w0 = w0_ref[0]
    x = x_ref[...].astype(jnp.float32)
    o_ref[...] = _fast_sine_f32(w0 * x).astype(o_ref.dtype)


# ---- tiling helpers ----------------------------------------------------------
def _choose_cols(n):
    """Largest multiple-of-128 column count (<= _MAX_COLS) dividing n; 0 if none."""
    cols = _MAX_COLS
    while cols >= _LANES:
        if n % cols == 0:
            return cols
        cols -= _LANES
    return 0


def _choose_block_rows(rows, cols, itemsize, sublane):
    """Byte-targeted row tile: ~2 MiB per tile, sublane-aligned, even #steps."""
    slab_bytes = rows * cols * itemsize
    if slab_bytes <= _SPLIT_THRESHOLD_BYTES:
        return rows                                   # single full-extent tile
    br = _TARGET_TILE_BYTES // (cols * itemsize)
    br = max(sublane, (br // sublane) * sublane)
    br = min(br, rows)
    # Prefer an even number of grid steps so both v7x TensorCores get work on
    # the last step; costs nothing on single-TC v5e/v6e.
    steps = -(-rows // br)
    if steps > 1 and steps % 2 == 1:
        steps += 1
        br = -(-rows // steps)
        br = -(-br // sublane) * sublane
        br = min(max(br, sublane), rows)
    return br


def _sine_2d(x2d, w0_arr):
    rows, cols = x2d.shape
    itemsize = jnp.dtype(x2d.dtype).itemsize
    sublane = max(8, 32 // itemsize)                  # 8 f32, 16 bf16, 32 int8
    block_rows = _choose_block_rows(rows, cols, itemsize, sublane)
    grid = (pl.cdiv(rows, block_rows),)
    return pl.pallas_call(
        _sine_kernel,
        out_shape=jax.ShapeDtypeStruct((rows, cols), x2d.dtype),
        grid_spec=pltpu.PrefetchScalarGridSpec(
            num_scalar_prefetch=0,
            grid=grid,
            in_specs=[
                pl.BlockSpec(memory_space=pltpu.MemorySpace.SMEM),   # w0
                pl.BlockSpec((block_rows, cols), lambda i: (i, 0)),  # x tile
            ],
            out_specs=pl.BlockSpec((block_rows, cols), lambda i: (i, 0)),
        ),
        compiler_params=pltpu.CompilerParams(
            dimension_semantics=("parallel",),
        ),
    )(w0_arr, x2d)


# ---- public wrapper ----------------------------------------------------------
def sine_layer(x, w0=30.0):
    """Apply sin(w0 * x) elementwise via a Pallas TPU kernel (any shape)."""
    orig_shape = x.shape
    n = x.size
    w0_arr = jnp.asarray([w0], dtype=jnp.float32)

    cols = _choose_cols(n)
    if cols:
        # Fast path: free reshape into a lane-dense slab; zero extra HBM copies.
        x2d = x.reshape(n // cols, cols)
        return _sine_2d(x2d, w0_arr).reshape(orig_shape)

    # Ragged path (n % 128 != 0): kernel on the aligned prefix, tiny tail in
    # plain JAX, single concatenate — no full-array pad/slice copies.
    x_flat = jnp.ravel(x)
    n_aligned = (n // _LANES) * _LANES
    if n_aligned == 0:
        # <128 elements: not worth a kernel launch.
        y = jnp.sin(jnp.float32(w0) * x_flat.astype(jnp.float32))
        return y.astype(x.dtype).reshape(orig_shape)
    head = x_flat[:n_aligned]
    head_cols = _choose_cols(n_aligned)
    head_out = _sine_2d(head.reshape(n_aligned // head_cols, head_cols),
                        w0_arr).reshape(-1)
    tail = x_flat[n_aligned:]
    tail_out = jnp.sin(jnp.float32(w0) * tail.astype(jnp.float32)).astype(x.dtype)
    return jnp.concatenate([head_out, tail_out]).reshape(orig_shape)


if __name__ == "__main__":
    key = jax.random.PRNGKey(0)
    # Small NCHW-shaped input, consistent with SineLayer usage inside a CNN.
    x = jax.random.normal(key, (2, 4, 16, 16), dtype=jnp.float32)
    w0 = 30.0

    out = jax.block_until_ready(sine_layer(x, w0=w0))

    # Correctness check against plain JAX reference (== torch.sin(w0 * x)).
    ref = jnp.sin(jnp.float32(w0) * x)
    assert out.shape == x.shape and out.dtype == x.dtype
    max_err = float(jnp.max(jnp.abs(out - ref)))
    assert jnp.allclose(out, ref, atol=1e-5, rtol=1e-5), max_err

    print("KERNEL_OK")
</pallas_src>

<mosaic_0001>
module attributes {stable_mosaic.version = 11 : i64} {
  func.func @_sine_kernel(%arg0: i32, %arg1: memref<1xf32, #tpu.memory_space<smem>>, %arg2: memref<2x1024xf32, #tpu.memory_space<vmem>>, %arg3: memref<2x1024xf32, #tpu.memory_space<vmem>>) attributes {dimension_semantics = [#tpu.dimension_semantics<parallel>], iteration_bounds = array<i64: 1>, scalar_prefetch = 0 : i64, scratch_operands = 0 : i64, tpu.core_type = #tpu.core_type<tc>, window_params = [{transform_indices = @transform_0, window_bounds = array<i64: 1>}, {transform_indices = @transform_1, window_bounds = array<i64: 2, 1024>}, {transform_indices = @transform_2, window_bounds = array<i64: 2, 1024>}]} {
    %c0 = arith.constant 0 : index
    %0 = memref.load %arg1[%c0] : memref<1xf32, #tpu.memory_space<smem>>
    %c0_0 = arith.constant 0 : index
    %c0_1 = arith.constant 0 : index
    %1 = vector.load %arg2[%c0_0, %c0_1] : memref<2x1024xf32, #tpu.memory_space<vmem>>, vector<2x1024xf32>
    %2 = vector.broadcast %0 : f32 to vector<2x1024xf32>
    %3 = arith.mulf %2, %1 : vector<2x1024xf32>
    %cst = arith.constant 0.159154937 : f32
    %4 = vector.broadcast %cst : f32 to vector<2x1024xf32>
    %5 = arith.mulf %3, %4 : vector<2x1024xf32>
    %cst_2 = arith.constant 5.000000e-01 : f32
    %6 = vector.broadcast %cst_2 : f32 to vector<2x1024xf32>
    %7 = arith.addf %5, %6 : vector<2x1024xf32>
    %8 = math.floor %7 : vector<2x1024xf32>
    %cst_3 = arith.constant 6.281250e+00 : f32
    %9 = vector.broadcast %cst_3 : f32 to vector<2x1024xf32>
    %10 = arith.mulf %8, %9 : vector<2x1024xf32>
    %11 = arith.subf %3, %10 : vector<2x1024xf32>
    %cst_4 = arith.constant 0.00193530717 : f32
    %12 = vector.broadcast %cst_4 : f32 to vector<2x1024xf32>
    %13 = arith.mulf %8, %12 : vector<2x1024xf32>
    %14 = arith.subf %11, %13 : vector<2x1024xf32>
    %cst_5 = arith.constant 0.000000e+00 : f32
    %15 = vector.broadcast %cst_5 : f32 to vector<2x1024xf32>
    %16 = arith.cmpf oge, %14, %15 : vector<2x1024xf32>
    %cst_6 = arith.constant 3.14159274 : f32
    %cst_7 = arith.constant -3.14159274 : f32
    %17 = vector.broadcast %cst_6 : f32 to vector<2x1024xf32>
    %18 = vector.broadcast %cst_7 : f32 to vector<2x1024xf32>
    %19 = arith.select %16, %17, %18 : vector<2x1024xi1>, vector<2x1024xf32>
    %20 = math.absf %14 : vector<2x1024xf32>
    %cst_8 = arith.constant 1.57079637 : f32
    %21 = vector.broadcast %cst_8 : f32 to vector<2x1024xf32>
    %22 = arith.cmpf ogt, %20, %21 : vector<2x1024xf32>
    %23 = arith.subf %19, %14 : vector<2x1024xf32>
    %24 = arith.select %22, %23, %14 : vector<2x1024xi1>, vector<2x1024xf32>
    %25 = arith.mulf %24, %24 : vector<2x1024xf32>
    %cst_9 = arith.constant 1.60590444E-10 : f32
    %26 = vector.broadcast %cst_9 : f32 to vector<2x1024xf32>
    %27 = arith.mulf %26, %25 : vector<2x1024xf32>
    %cst_10 = arith.constant 2.50521079E-8 : f32
    %28 = vector.broadcast %cst_10 : f32 to vector<2x1024xf32>
    %29 = arith.subf %27, %28 : vector<2x1024xf32>
    %30 = arith.mulf %29, %25 : vector<2x1024xf32>
    %cst_11 = arith.constant 2.75573188E-6 : f32
    %31 = vector.broadcast %cst_11 : f32 to vector<2x1024xf32>
    %32 = arith.addf %30, %31 : vector<2x1024xf32>
    %33 = arith.mulf %32, %25 : vector<2x1024xf32>
    %cst_12 = arith.constant 1.98412701E-4 : f32
    %34 = vector.broadcast %cst_12 : f32 to vector<2x1024xf32>
    %35 = arith.subf %33, %34 : vector<2x1024xf32>
    %36 = arith.mulf %35, %25 : vector<2x1024xf32>
    %cst_13 = arith.constant 0.00833333377 : f32
    %37 = vector.broadcast %cst_13 : f32 to vector<2x1024xf32>
    %38 = arith.addf %36, %37 : vector<2x1024xf32>
    %39 = arith.mulf %38, %25 : vector<2x1024xf32>
    %cst_14 = arith.constant 0.166666672 : f32
    %40 = vector.broadcast %cst_14 : f32 to vector<2x1024xf32>
    %41 = arith.subf %39, %40 : vector<2x1024xf32>
    %42 = arith.mulf %25, %41 : vector<2x1024xf32>
    %43 = arith.mulf %24, %42 : vector<2x1024xf32>
    %44 = arith.addf %24, %43 : vector<2x1024xf32>
    %c0_15 = arith.constant 0 : index
    %c0_16 = arith.constant 0 : index
    %45 = vector.load %arg3[%c0_15, %c0_16] : memref<2x1024xf32, #tpu.memory_space<vmem>>, vector<2x1024xf32>
    tpu.vector_store %arg3[%c0_15, %c0_16], %44 {strides = array<i32>} : memref<2x1024xf32, #tpu.memory_space<vmem>>, vector<2x1024xf32>,
    return
  }
  func.func @transform_0(%arg0: i32) -> i32 {
    %c0_i32 = arith.constant 0 : i32
    %c0_i32_0 = arith.constant 0 : i32
    return %c0_i32 : i32
  }
  func.func @transform_1(%arg0: i32) -> (i32, i32) {
    %c0_i32 = arith.constant 0 : i32
    %c0_i32_0 = arith.constant 0 : i32
    return %arg0, %c0_i32 : i32, i32
  }
  func.func @transform_2(%arg0: i32) -> (i32, i32) {
    %c0_i32 = arith.constant 0 : i32
    %c0_i32_0 = arith.constant 0 : i32
    return %arg0, %c0_i32 : i32, i32
  }
}

</mosaic_0001>

<bundles_post_ra>
// kernel: tpu_custom_call.1
= control target key start
LH: loop header
LB: loop body
LE: loop exit
PB: predicated region body
PF: predicated region fallthrough
CT: control target
= control target key end

     0   :  { %8 = vsyncpa [#allocation4], 0  ;;  %s194_s0 = inlined_call_operand.<no memory space> [shape: f32[1], index: 0, kind: input, shape index: {}]   ;;  %s195_s1 = inlined_call_operand.hbm [shape: f32[2,1024], index: 1, kind: input, shape index: {}]   ;;  %s196_s2 = inlined_call_operand.hbm [shape: f32[2,1024], index: 2, kind: output, shape index: {}]  }
   0x1   :  { %9 = vsyncpa [#allocation5], 0  ;;  %s17_s11 = sshll.u32 %s195_s1, 4  ;;  %s167_s12 = smov [#allocation3]   ;;  %s18_s11 = int_to_ptr.hbm [resolvable:$true] %s17_s11 }
   0x2   :  { %s19_s13 = sshll.u32 %s167_s12, 4  ;;  %s20_s13 = int_to_ptr.vmem [resolvable:$true] %s19_s13 }
   0x3   :  { %22 = dma.hbm_to_vmem [thread:$0]  %s18_s11, 256, %s20_s13, [#allocation4]  }
   0x4   :  { %163 = dma.done.wait [#allocation4], 256  }
   0x5   :  { %164 = vsyncadd [#allocation4], 4294967040  ;;  %v30_v0 = vstv %s194_s0  ;;  %v28_v1 = vld [vmem:[#allocation3] sm:$0xff]  ;;  %v29_v2 = vld [vmem:[#allocation3 + $0x8] sm:$0xff]  ;;  %v168_v21 = vmov -3.1415927  }
   0x6   :  { %v31_v3 = vmul.f32 %v30_v0, %v28_v1  ;;  %v32_v4 = vmul.f32 %v30_v0, %v29_v2  ;;  %s169_s0 = smov [#allocation6]   ;;  %s96_s18 = sshll.u32 %s196_s2, 4  ;;  %s97_s18 = int_to_ptr.hbm [resolvable:$true] %s96_s18 }
   0x7   :  { %s94_s1 = sshll.u32 %s169_s0, 4  ;;  %s95_s1 = int_to_ptr.vmem [resolvable:$true] %s94_s1 }
   0x8   :  { %v33_v5 = vmul.f32 0.15915494, %v31_v3  ;;  %v34_v6 = vmul.f32 0.15915494, %v32_v4 }
   0xa   :  { %v35_v7 = vadd.f32 0.5, %v33_v5  ;;  %v36_v8 = vadd.f32 0.5, %v34_v6 }
   0xc   :  { %v37_v9 = vfloor.f32 %v35_v7  ;;  %v38_v10 = vfloor.f32 %v36_v8 }
   0xe   :  { %v39_v11 = vmul.f32 6.28125, %v37_v9  ;;  %v43_v12 = vmul.f32 0.0019353072, %v37_v9  ;;  %v40_v13 = vmul.f32 6.28125, %v38_v10  ;;  %v44_v14 = vmul.f32 0.0019353072, %v38_v10 }
  0x10   :  { %v41_v15 = vsub.f32 %v31_v3, %v39_v11  ;;  %v42_v16 = vsub.f32 %v32_v4, %v40_v13 }
  0x12   :  { %v45_v17 = vsub.f32 %v41_v15, %v43_v12  ;;  %v46_v18 = vsub.f32 %v42_v16, %v44_v14 }
  0x14   :  { %vm47_vm0 = vcmp.ge.f32.partialorder %v45_v17, 0.0  ;;  %v51_v19 = vand.u32 2147483647, %v45_v17  ;;  %vm48_vm1 = vcmp.ge.f32.partialorder %v46_v18, 0.0  ;;  %v52_v20 = vand.u32 2147483647, %v46_v18 }
  0x15   :  { %v49_v22 = vsel %vm47_vm0, 3.1415927, %v168_v21  ;;  %v50_v23 = vsel %vm48_vm1, 3.1415927, %v168_v21 }
  0x16   :  { %vm53_vm2 = vcmp.gt.f32.partialorder %v51_v19, 1.5707964  ;;  %v55_v24 = vsub.f32 %v49_v22, %v45_v17  ;;  %vm54_vm3 = vcmp.gt.f32.partialorder %v52_v20, 1.5707964  ;;  %v56_v25 = vsub.f32 %v50_v23, %v46_v18 }
  0x18   :  { %v57_v26 = vsel %vm53_vm2, %v55_v24, %v45_v17  ;;  %v58_v27 = vsel %vm54_vm3, %v56_v25, %v46_v18 }
  0x19   :  { %v59_v28 = vmul.f32 %v57_v26, %v57_v26  ;;  %v60_v29 = vmul.f32 %v58_v27, %v58_v27 }
  0x1b   :  { %v61_v30 = vmul.f32 1.6059044e-10, %v59_v28  ;;  %v62_v31 = vmul.f32 1.6059044e-10, %v60_v29 }
  0x1d   :  { %v106_v32 = vadd.f32 -2.5052108e-08, %v61_v30  ;;  %v107_v33 = vadd.f32 -2.5052108e-08, %v62_v31 }
  0x1f   :  { %v65_v34 = vmul.f32 %v106_v32, %v59_v28  ;;  %v66_v35 = vmul.f32 %v107_v33, %v60_v29 }
  0x21   :  { %v67_v36 = vadd.f32 2.7557319e-06, %v65_v34  ;;  %v68_v37 = vadd.f32 2.7557319e-06, %v66_v35 }
  0x23   :  { %v69_v38 = vmul.f32 %v67_v36, %v59_v28  ;;  %v70_v39 = vmul.f32 %v68_v37, %v60_v29 }
  0x25   :  { %v108_v40 = vadd.f32 -0.0001984127, %v69_v38  ;;  %v109_v41 = vadd.f32 -0.0001984127, %v70_v39 }
  0x27   :  { %v73_v42 = vmul.f32 %v108_v40, %v59_v28  ;;  %v74_v43 = vmul.f32 %v109_v41, %v60_v29 }
  0x29   :  { %v75_v44 = vadd.f32 0.008333334, %v73_v42  ;;  %v76_v45 = vadd.f32 0.008333334, %v74_v43 }
  0x2b   :  { %v77_v46 = vmul.f32 %v75_v44, %v59_v28  ;;  %v78_v47 = vmul.f32 %v76_v45, %v60_v29 }
  0x2d   :  { %v110_v48 = vadd.f32 -0.16666667, %v77_v46  ;;  %v111_v49 = vadd.f32 -0.16666667, %v78_v47 }
  0x2f   :  { %v81_v50 = vmul.f32 %v110_v48, %v59_v28  ;;  %v82_v51 = vmul.f32 %v111_v49, %v60_v29 }
  0x31   :  { %v83_v52 = vmul.f32 %v81_v50, %v57_v26  ;;  %v84_v53 = vmul.f32 %v82_v51, %v58_v27 }
  0x33   :  { %v85_v54 = vadd.f32 %v83_v52, %v57_v26  ;;  %v86_v55 = vadd.f32 %v84_v53, %v58_v27 }
  0x35   :  { %87 = vst [vmem:[#allocation6] sm:$0xff] %v85_v54 }
  0x36   :  { %88 = vst [vmem:[#allocation6 + $0x8] sm:$0xff] %v86_v55 }
  0x37   :  { %99 = dma.vmem_to_hbm [thread:$0]  %s95_s1, 256, %s97_s18, [#allocation5]  }
  0x38   :  { %165 = dma.done.wait [#allocation5], 256  }
  0x39   :  { %166 = vsyncadd [#allocation5], 4294967040 }
  0x3a   :  { %104 = vsyncpa [#allocation4], 1 }
  0x3b   :  { %105 = vsyncpa [#allocation5], 1 }

</bundles_post_ra>
